<compile_context>
chip_gen: v6e
topology: v6e:2x2x1
jax: 0.10.0
libtpu: 0.0.40
codegen_flags: <defaults>
</compile_context>

<pallas_src>
import math
import functools

import jax
import jax.numpy as jnp
from jax.experimental import pallas as pl
from jax.experimental.pallas import tpu as pltpu

_MIB = 1024 * 1024


def _mha_kernel(q_ref, k_ref, v_ref, bias_ref,
                wqkv_ref, bqkv_ref, wo_ref, bo_ref,
                o_ref, attn_sc, *, num_heads, d_k, compute_dtype):
    bt, S, D = q_ref.shape
    M = bt * S
    cdt = compute_dtype
    scale = jnp.float32(1.0 / math.sqrt(d_k))

    # Weights are pre-transposed to (in, out) in the wrapper, so the projections
    # are plain x @ w matmuls with f32 accumulation on the MXU.
    def project(x_ref, idx):
        x = x_ref[...].astype(cdt).reshape(M, D)
        return jnp.dot(x, wqkv_ref[idx],
                       preferred_element_type=jnp.float32) + bqkv_ref[idx]

    # Fused-weight projections over the whole (bt*S, D) block; 1/sqrt(d_k) is
    # folded into Q (S*D multiplies instead of H*S*S).
    qp = (project(q_ref, 0) * scale).astype(cdt).reshape(bt, S, D)
    kp = project(k_ref, 1).astype(cdt).reshape(bt, S, D)
    vp = project(v_ref, 2).astype(cdt).reshape(bt, S, D)

    bias = bias_ref[...]                                # (bt, 1, S) additive mask

    # TODO(synk): for num_heads >= 8 with long sequences switch this static
    # unroll to lax.fori_loop over VMEM-resident qp/kp/vp to bound vreg pressure,
    # and tile the queries flash-style so live VMEM is independent of S.
    for h in range(num_heads):
        lo = h * d_k
        q_h = qp[:, :, lo:lo + d_k]                     # (bt, S, d_k)
        k_h = kp[:, :, lo:lo + d_k]
        v_h = vp[:, :, lo:lo + d_k]

        s_h = jnp.einsum('bqd,bkd->bqk', q_h, k_h,
                         preferred_element_type=jnp.float32) + bias  # (bt, S, S)

        m_h = jnp.max(s_h, axis=-1, keepdims=True)
        e_h = jnp.exp(s_h - m_h)
        denom = jnp.sum(e_h, axis=-1, keepdims=True)
        p_h = (e_h * pl.reciprocal(denom, approx=True)).astype(cdt)

        o_h = jnp.einsum('bqk,bkd->bqd', p_h, v_h,
                         preferred_element_type=jnp.float32)         # (bt, S, d_k)

        # combine_heads: write this head's slice straight into the VMEM scratch
        # (no Python list, no H-way concatenate / relayout, small live set).
        attn_sc[:, :, lo:lo + d_k] = o_h.astype(cdt)

    attn = attn_sc[...].reshape(M, D)
    y = jnp.dot(attn, wo_ref[...], preferred_element_type=jnp.float32) + bo_ref[...]
    o_ref[...] = y.reshape(bt, S, D).astype(o_ref.dtype)


def pack_mha_params(params, compute_dtype=jnp.bfloat16):
    """Pack/cast the projection weights once (cache the result across calls).

    PyTorch stores Linear weights as (out, in); here they are transposed to
    (in, out) so the kernel never contracts against a transposed operand, and
    Q/K/V weights are stacked so the kernel has 2 weight DMA streams instead of 6.
    """
    D = params['wq'].shape[0]
    wqkv = jnp.stack([params['wq'].T, params['wk'].T, params['wv'].T]).astype(compute_dtype)
    bqkv = jnp.stack([params['bq'], params['bk'], params['bv']]).reshape(3, 1, D).astype(jnp.float32)
    wo = params['wo'].T.astype(compute_dtype)
    bo = params['bo'].reshape(1, D).astype(jnp.float32)
    return wqkv, bqkv, wo, bo


def _vmem_limit_bytes():
    cap = None
    try:
        cap = getattr(pltpu.get_tpu_info(), "vmem_capacity_bytes", None)
    except Exception:
        cap = None
    if not cap:
        cap = 64 * _MIB        # conservative default (v7x per-core physical VMEM)
    # ~48 MiB on v7x (64 MiB physical), 64 MiB on v5e/v6e (128 MiB physical).
    return int(max(32 * _MIB, min(cap - 16 * _MIB, 64 * _MIB)))


def _pick_batch_tile(B, S, D, in_bytes, out_bytes, c_bytes, vmem_limit, weight_bytes):
    # Rough VMEM footprint per batch element in one grid step.
    act_io = S * D * (3 * in_bytes + out_bytes) * 2     # double-buffered in/out blocks
    proj = 3 * S * D * 4                                # qp/kp/vp f32 values
    attn = S * D * c_bytes                              # combine-heads scratch
    scores = 3 * S * S * 4                              # scores/exp/probs (one head live)
    outp = S * D * 4                                    # f32 W_o matmul result
    bias = 2 * S * 4
    per_b = act_io + proj + attn + scores + outp + bias
    budget = int(vmem_limit * 0.7) - weight_bytes
    bt = max(1, budget // per_b)
    bt = min(bt, max(1, 1024 // max(1, S)))             # ~1k rows feeding the MXU is plenty
    bt = min(bt, B)
    if B > 1:                                           # keep >= 2 grid steps (v7x has 2 TCs)
        bt = min(bt, pl.cdiv(B, 2))
    # Prefer a tile that divides B so the remainder jnp.pad HBM pass is skipped.
    for cand in range(bt, max(bt // 2, 1) - 1, -1):
        if B % cand == 0:
            return cand
    return bt


def multi_head_attention(Q, K, V, params, mask=None, *, num_heads,
                         compute_dtype=jnp.bfloat16, batch_tile=None):
    """Pallas MHA forward.

    Q, K, V : (B, S, D), native dtype (cast to `compute_dtype` inside the kernel).
    mask    : (B, S) bool or None; True = padded key position.
    params  : dict with 'wq','bq','wk','bk','wv','bv','wo','bo' (PyTorch (out, in)
              weights), or the tuple returned by `pack_mha_params` (preferred:
              pack once and reuse across calls).
    compute_dtype : dtype fed to the MXU (bf16 is native on v5e/v6e/v7x);
              softmax and accumulation stay f32.
    """
    B, S, D = Q.shape
    assert D % num_heads == 0, "d_model must be divisible by num_heads"
    d_k = D // num_heads
    out_dtype = Q.dtype

    if isinstance(params, dict):
        wqkv, bqkv, wo, bo = pack_mha_params(params, compute_dtype)
    else:
        wqkv, bqkv, wo, bo = params
        wqkv = wqkv.astype(compute_dtype)
        wo = wo.astype(compute_dtype)

    # Additive key-padding bias, shaped (B, 1, S) so every block's trailing two
    # dims equal the full array dims (no sublane-alignment constraint on bt).
    if mask is None:
        bias = jnp.zeros((B, 1, S), jnp.float32)
    else:
        bias = jnp.where(mask, jnp.float32(-1e9), jnp.float32(0.0)).reshape(B, 1, S)

    c_bytes = jnp.dtype(compute_dtype).itemsize
    in_bytes = jnp.dtype(Q.dtype).itemsize
    out_bytes = jnp.dtype(out_dtype).itemsize
    weight_bytes = 4 * D * D * c_bytes + 4 * D * 4

    vmem_limit = _vmem_limit_bytes()
    if batch_tile is None:
        bt = _pick_batch_tile(B, S, D, in_bytes, out_bytes, c_bytes,
                              vmem_limit, weight_bytes)
    else:
        bt = max(1, min(int(batch_tile), B))

    Bp = pl.cdiv(B, bt) * bt
    Qc, Kc, Vc = Q, K, V
    if Bp != B:
        pad = ((0, Bp - B), (0, 0), (0, 0))
        Qc, Kc, Vc = jnp.pad(Q, pad), jnp.pad(K, pad), jnp.pad(V, pad)
        bias = jnp.pad(bias, pad)

    act_spec = pl.BlockSpec((bt, S, D), lambda b: (b, 0, 0))
    bias_spec = pl.BlockSpec((bt, 1, S), lambda b: (b, 0, 0))

    # Weights/biases are grid-invariant; once they are big enough to matter,
    # single-buffer them (saves ~4*D^2*c_bytes of VMEM vs default double-buffering
    # -- the difference between fitting and spilling on v7x's 64 MiB VMEM).
    def weight_spec(shape):
        idx = lambda b: (0,) * len(shape)
        if D >= 512:
            try:
                return pl.BlockSpec(shape, idx, pipeline_mode=pl.Buffered(1))
            except Exception:
                pass
        return pl.BlockSpec(shape, idx)

    kernel = functools.partial(_mha_kernel, num_heads=num_heads, d_k=d_k,
                               compute_dtype=compute_dtype)

    out = pl.pallas_call(
        kernel,
        out_shape=jax.ShapeDtypeStruct((Bp, S, D), out_dtype),
        grid_spec=pltpu.PrefetchScalarGridSpec(
            num_scalar_prefetch=0,
            grid=(Bp // bt,),
            in_specs=[act_spec, act_spec, act_spec, bias_spec,
                      weight_spec((3, D, D)), weight_spec((3, 1, D)),
                      weight_spec((D, D)), weight_spec((1, D))],
            out_specs=act_spec,
            scratch_shapes=[pltpu.VMEM((bt, S, D), compute_dtype)],
        ),
        compiler_params=pltpu.CompilerParams(
            dimension_semantics=("parallel",),
            vmem_limit_bytes=vmem_limit,
        ),
    )(Qc, Kc, Vc, bias, wqkv, bqkv, wo, bo)

    return out[:B] if Bp != B else out


def _reference_mha(Q, K, V, params, mask, num_heads):
    """Pure-JAX reference (mirrors the PyTorch module)."""
    B, S, D = Q.shape
    d_k = D // num_heads

    def lin(x, w, b):
        return x @ w.T + b

    def split(x):
        return x.reshape(B, S, num_heads, d_k).transpose(0, 2, 1, 3)

    q = split(lin(Q, params['wq'], params['bq']))
    k = split(lin(K, params['wk'], params['bk']))
    v = split(lin(V, params['wv'], params['bv']))

    scores = jnp.einsum('bhqd,bhkd->bhqk', q, k) / math.sqrt(d_k)
    if mask is not None:
        scores = jnp.where(mask[:, None, None, :], -1e9, scores)
    probs = jax.nn.softmax(scores, axis=-1)
    out = jnp.einsum('bhqk,bhkd->bhqd', probs, v)
    out = out.transpose(0, 2, 1, 3).reshape(B, S, D)
    return lin(out, params['wo'], params['bo'])


if __name__ == "__main__":
    B, S, D, H = 2, 8, 32, 4

    key = jax.random.PRNGKey(0)
    keys = jax.random.split(key, 12)
    bound = 1.0 / math.sqrt(D)

    params = {
        'wq': jax.random.uniform(keys[0], (D, D), jnp.float32, -bound, bound),
        'bq': jax.random.uniform(keys[1], (D,), jnp.float32, -bound, bound),
        'wk': jax.random.uniform(keys[2], (D, D), jnp.float32, -bound, bound),
        'bk': jax.random.uniform(keys[3], (D,), jnp.float32, -bound, bound),
        'wv': jax.random.uniform(keys[4], (D, D), jnp.float32, -bound, bound),
        'bv': jax.random.uniform(keys[5], (D,), jnp.float32, -bound, bound),
        'wo': jax.random.uniform(keys[6], (D, D), jnp.float32, -bound, bound),
        'bo': jax.random.uniform(keys[7], (D,), jnp.float32, -bound, bound),
    }

    Q = jax.random.normal(keys[8], (B, S, D), jnp.float32)
    K = jax.random.normal(keys[9], (B, S, D), jnp.float32)
    V = jax.random.normal(keys[10], (B, S, D), jnp.float32)
    # padding mask: last two positions of batch element 1 are padded
    mask = jnp.zeros((B, S), dtype=jnp.bool_).at[1, -2:].set(True)

    ref = _reference_mha(Q, K, V, params, mask, H)

    # f32 compute path (tolerance loosened slightly for the EUP approx reciprocal).
    out = multi_head_attention(Q, K, V, params, mask=mask, num_heads=H,
                               compute_dtype=jnp.float32)
    out = jax.block_until_ready(out)
    assert out.shape == (B, S, D)
    assert jnp.allclose(out, ref, atol=5e-3, rtol=5e-3), "Pallas MHA (f32) mismatch vs reference"

    # Default bf16 MXU path using packed (cacheable) weights; f32 accumulation.
    packed = pack_mha_params(params, jnp.bfloat16)
    out_bf16 = multi_head_attention(Q, K, V, packed, mask=mask, num_heads=H,
                                    compute_dtype=jnp.bfloat16)
    out_bf16 = jax.block_until_ready(out_bf16)
    assert jnp.allclose(out_bf16, ref, atol=1e-1, rtol=1e-1), "Pallas MHA (bf16) mismatch vs reference"

    print("KERNEL_OK")
</pallas_src>

<mosaic_0001>
module attributes {stable_mosaic.version = 11 : i64} {
  func.func @_mha_kernel(%arg0: i32, %arg1: memref<1x8x32xf32, #tpu.memory_space<vmem>>, %arg2: memref<1x8x32xf32, #tpu.memory_space<vmem>>, %arg3: memref<1x8x32xf32, #tpu.memory_space<vmem>>, %arg4: memref<1x1x8xf32, #tpu.memory_space<vmem>>, %arg5: memref<3x32x32xf32, #tpu.memory_space<vmem>>, %arg6: memref<3x1x32xf32, #tpu.memory_space<vmem>>, %arg7: memref<32x32xf32, #tpu.memory_space<vmem>>, %arg8: memref<1x32xf32, #tpu.memory_space<vmem>>, %arg9: memref<1x8x32xf32, #tpu.memory_space<vmem>>, %arg10: memref<1x8x32xf32, #tpu.memory_space<vmem>>) attributes {dimension_semantics = [#tpu.dimension_semantics<parallel>], iteration_bounds = array<i64: 2>, scalar_prefetch = 0 : i64, scratch_operands = 1 : i64, tpu.core_type = #tpu.core_type<tc>, window_params = [{transform_indices = @transform_0, window_bounds = array<i64: 1, 8, 32>}, {transform_indices = @transform_1, window_bounds = array<i64: 1, 8, 32>}, {transform_indices = @transform_2, window_bounds = array<i64: 1, 8, 32>}, {transform_indices = @transform_3, window_bounds = array<i64: 1, 1, 8>}, {pipeline_mode = #tpu.pipeline_mode<synchronous>, transform_indices = @transform_4, window_bounds = array<i64: 3, 32, 32>}, {pipeline_mode = #tpu.pipeline_mode<synchronous>, transform_indices = @transform_5, window_bounds = array<i64: 3, 1, 32>}, {pipeline_mode = #tpu.pipeline_mode<synchronous>, transform_indices = @transform_6, window_bounds = array<i64: 32, 32>}, {pipeline_mode = #tpu.pipeline_mode<synchronous>, transform_indices = @transform_7, window_bounds = array<i64: 1, 32>}, {transform_indices = @transform_8, window_bounds = array<i64: 1, 8, 32>}]} {
    %c0 = arith.constant 0 : index
    %c0_0 = arith.constant 0 : index
    %c0_1 = arith.constant 0 : index
    %0 = vector.load %arg1[%c0, %c0_0, %c0_1] : memref<1x8x32xf32, #tpu.memory_space<vmem>>, vector<1x8x32xf32>
    %1 = vector.shape_cast %0 : vector<1x8x32xf32> to vector<8x32xf32>
    %c0_2 = arith.constant 0 : index
    %c0_3 = arith.constant 0 : index
    %c0_4 = arith.constant 0 : index
    %2 = vector.load %arg5[%c0_2, %c0_3, %c0_4] : memref<3x32x32xf32, #tpu.memory_space<vmem>>, vector<1x32x32xf32>
    %3 = vector.shape_cast %2 : vector<1x32x32xf32> to vector<32x32xf32>
    %cst = arith.constant dense<0.000000e+00> : vector<8x32xf32>
    %4 = tpu.matmul %1, %3, %cst {dimension_numbers = #tpu.dot_dimension_numbers<[1], [0], [0], [1], [0, 0, 1, 1], [], []>} : vector<8x32xf32>, vector<32x32xf32>, vector<8x32xf32> -> vector<8x32xf32>
    %c0_5 = arith.constant 0 : index
    %c0_6 = arith.constant 0 : index
    %c0_7 = arith.constant 0 : index
    %5 = vector.load %arg6[%c0_5, %c0_6, %c0_7] : memref<3x1x32xf32, #tpu.memory_space<vmem>>, vector<1x1x32xf32>
    %6 = vector.shape_cast %5 : vector<1x1x32xf32> to vector<1x32xf32>
    %7 = vector.broadcast %6 : vector<1x32xf32> to vector<8x32xf32>
    %8 = arith.addf %4, %7 : vector<8x32xf32>
    %cst_8 = arith.constant 0.353553385 : f32
    %9 = vector.broadcast %cst_8 : f32 to vector<8x32xf32>
    %10 = arith.mulf %8, %9 : vector<8x32xf32>
    %11 = vector.shape_cast %10 : vector<8x32xf32> to vector<1x8x32xf32>
    %c0_9 = arith.constant 0 : index
    %c0_10 = arith.constant 0 : index
    %c0_11 = arith.constant 0 : index
    %12 = vector.load %arg2[%c0_9, %c0_10, %c0_11] : memref<1x8x32xf32, #tpu.memory_space<vmem>>, vector<1x8x32xf32>
    %13 = vector.shape_cast %12 : vector<1x8x32xf32> to vector<8x32xf32>
    %c1 = arith.constant 1 : index
    %c0_12 = arith.constant 0 : index
    %c0_13 = arith.constant 0 : index
    %14 = vector.load %arg5[%c1, %c0_12, %c0_13] : memref<3x32x32xf32, #tpu.memory_space<vmem>>, vector<1x32x32xf32>
    %15 = vector.shape_cast %14 : vector<1x32x32xf32> to vector<32x32xf32>
    %cst_14 = arith.constant dense<0.000000e+00> : vector<8x32xf32>
    %16 = tpu.matmul %13, %15, %cst_14 {dimension_numbers = #tpu.dot_dimension_numbers<[1], [0], [0], [1], [0, 0, 1, 1], [], []>} : vector<8x32xf32>, vector<32x32xf32>, vector<8x32xf32> -> vector<8x32xf32>
    %c1_15 = arith.constant 1 : index
    %c0_16 = arith.constant 0 : index
    %c0_17 = arith.constant 0 : index
    %17 = vector.load %arg6[%c1_15, %c0_16, %c0_17] : memref<3x1x32xf32, #tpu.memory_space<vmem>>, vector<1x1x32xf32>
    %18 = vector.shape_cast %17 : vector<1x1x32xf32> to vector<1x32xf32>
    %19 = vector.broadcast %18 : vector<1x32xf32> to vector<8x32xf32>
    %20 = arith.addf %16, %19 : vector<8x32xf32>
    %21 = vector.shape_cast %20 : vector<8x32xf32> to vector<1x8x32xf32>
    %c0_18 = arith.constant 0 : index
    %c0_19 = arith.constant 0 : index
    %c0_20 = arith.constant 0 : index
    %22 = vector.load %arg3[%c0_18, %c0_19, %c0_20] : memref<1x8x32xf32, #tpu.memory_space<vmem>>, vector<1x8x32xf32>
    %23 = vector.shape_cast %22 : vector<1x8x32xf32> to vector<8x32xf32>
    %c2 = arith.constant 2 : index
    %c0_21 = arith.constant 0 : index
    %c0_22 = arith.constant 0 : index
    %24 = vector.load %arg5[%c2, %c0_21, %c0_22] : memref<3x32x32xf32, #tpu.memory_space<vmem>>, vector<1x32x32xf32>
    %25 = vector.shape_cast %24 : vector<1x32x32xf32> to vector<32x32xf32>
    %cst_23 = arith.constant dense<0.000000e+00> : vector<8x32xf32>
    %26 = tpu.matmul %23, %25, %cst_23 {dimension_numbers = #tpu.dot_dimension_numbers<[1], [0], [0], [1], [0, 0, 1, 1], [], []>} : vector<8x32xf32>, vector<32x32xf32>, vector<8x32xf32> -> vector<8x32xf32>
    %c2_24 = arith.constant 2 : index
    %c0_25 = arith.constant 0 : index
    %c0_26 = arith.constant 0 : index
    %27 = vector.load %arg6[%c2_24, %c0_25, %c0_26] : memref<3x1x32xf32, #tpu.memory_space<vmem>>, vector<1x1x32xf32>
    %28 = vector.shape_cast %27 : vector<1x1x32xf32> to vector<1x32xf32>
    %29 = vector.broadcast %28 : vector<1x32xf32> to vector<8x32xf32>
    %30 = arith.addf %26, %29 : vector<8x32xf32>
    %31 = vector.shape_cast %30 : vector<8x32xf32> to vector<1x8x32xf32>
    %c0_27 = arith.constant 0 : index
    %c0_28 = arith.constant 0 : index
    %c0_29 = arith.constant 0 : index
    %32 = vector.load %arg4[%c0_27, %c0_28, %c0_29] : memref<1x1x8xf32, #tpu.memory_space<vmem>>, vector<1x1x8xf32>
    %33 = vector.extract_strided_slice %11 {offsets = [0, 0, 0], sizes = [1, 8, 8], strides = [1, 1, 1]} : vector<1x8x32xf32> to vector<1x8x8xf32>
    %34 = vector.extract_strided_slice %21 {offsets = [0, 0, 0], sizes = [1, 8, 8], strides = [1, 1, 1]} : vector<1x8x32xf32> to vector<1x8x8xf32>
    %35 = vector.extract_strided_slice %31 {offsets = [0, 0, 0], sizes = [1, 8, 8], strides = [1, 1, 1]} : vector<1x8x32xf32> to vector<1x8x8xf32>
    "tpu.trace_start"() <{level = 10 : i32, message = "bqd,bkd->bqk"}> : () -> ()
    %cst_30 = arith.constant dense<0.000000e+00> : vector<1x8x8xf32>
    %36 = tpu.matmul %33, %34, %cst_30 {dimension_numbers = #tpu.dot_dimension_numbers<[2], [2], [1], [1], [0, 0, 0, 1, 1, 1], [0], [0]>} : vector<1x8x8xf32>, vector<1x8x8xf32>, vector<1x8x8xf32> -> vector<1x8x8xf32>
    "tpu.trace_stop"() : () -> ()
    %37 = vector.broadcast %32 : vector<1x1x8xf32> to vector<1x8x8xf32>
    %38 = arith.addf %36, %37 : vector<1x8x8xf32>
    %cst_31 = arith.constant dense<0xFF800000> : vector<1x8xf32>
    %39 = vector.multi_reduction <maximumf>, %38, %cst_31 [2] : vector<1x8x8xf32> to vector<1x8xf32>
    %40 = vector.shape_cast %39 : vector<1x8xf32> to vector<1x8x1xf32>
    %41 = vector.broadcast %40 : vector<1x8x1xf32> to vector<1x8x8xf32>
    %42 = arith.subf %38, %41 : vector<1x8x8xf32>
    %43 = math.exp %42 : vector<1x8x8xf32>
    %cst_32 = arith.constant dense<0.000000e+00> : vector<1x8xf32>
    %44 = vector.multi_reduction <add>, %43, %cst_32 [2] : vector<1x8x8xf32> to vector<1x8xf32>
    %45 = vector.shape_cast %44 : vector<1x8xf32> to vector<1x8x1xf32>
    %46 = tpu.reciprocal %45 {approx = true} : vector<1x8x1xf32> -> vector<1x8x1xf32>
    %47 = vector.broadcast %46 : vector<1x8x1xf32> to vector<1x8x8xf32>
    %48 = arith.mulf %43, %47 : vector<1x8x8xf32>
    "tpu.trace_start"() <{level = 10 : i32, message = "bqk,bkd->bqd"}> : () -> ()
    %cst_33 = arith.constant dense<0.000000e+00> : vector<1x8x8xf32>
    %49 = tpu.matmul %48, %35, %cst_33 {dimension_numbers = #tpu.dot_dimension_numbers<[2], [1], [1], [2], [0, 0, 0, 1, 1, 2], [0], [0]>} : vector<1x8x8xf32>, vector<1x8x8xf32>, vector<1x8x8xf32> -> vector<1x8x8xf32>
    "tpu.trace_stop"() : () -> ()
    %c0_34 = arith.constant 0 : index
    %c0_35 = arith.constant 0 : index
    %c0_36 = arith.constant 0 : index
    %50 = vector.load %arg10[%c0_34, %c0_35, %c0_36] : memref<1x8x32xf32, #tpu.memory_space<vmem>>, vector<1x8x8xf32>
    tpu.vector_store %arg10[%c0_34, %c0_35, %c0_36], %49 {strides = array<i32>} : memref<1x8x32xf32, #tpu.memory_space<vmem>>, vector<1x8x8xf32>,
    %51 = vector.extract_strided_slice %11 {offsets = [0, 0, 8], sizes = [1, 8, 8], strides = [1, 1, 1]} : vector<1x8x32xf32> to vector<1x8x8xf32>
    %52 = vector.extract_strided_slice %21 {offsets = [0, 0, 8], sizes = [1, 8, 8], strides = [1, 1, 1]} : vector<1x8x32xf32> to vector<1x8x8xf32>
    %53 = vector.extract_strided_slice %31 {offsets = [0, 0, 8], sizes = [1, 8, 8], strides = [1, 1, 1]} : vector<1x8x32xf32> to vector<1x8x8xf32>
    "tpu.trace_start"() <{level = 10 : i32, message = "bqd,bkd->bqk"}> : () -> ()
    %cst_37 = arith.constant dense<0.000000e+00> : vector<1x8x8xf32>
    %54 = tpu.matmul %51, %52, %cst_37 {dimension_numbers = #tpu.dot_dimension_numbers<[2], [2], [1], [1], [0, 0, 0, 1, 1, 1], [0], [0]>} : vector<1x8x8xf32>, vector<1x8x8xf32>, vector<1x8x8xf32> -> vector<1x8x8xf32>
    "tpu.trace_stop"() : () -> ()
    %55 = vector.broadcast %32 : vector<1x1x8xf32> to vector<1x8x8xf32>
    %56 = arith.addf %54, %55 : vector<1x8x8xf32>
    %cst_38 = arith.constant dense<0xFF800000> : vector<1x8xf32>
    %57 = vector.multi_reduction <maximumf>, %56, %cst_38 [2] : vector<1x8x8xf32> to vector<1x8xf32>
    %58 = vector.shape_cast %57 : vector<1x8xf32> to vector<1x8x1xf32>
    %59 = vector.broadcast %58 : vector<1x8x1xf32> to vector<1x8x8xf32>
    %60 = arith.subf %56, %59 : vector<1x8x8xf32>
    %61 = math.exp %60 : vector<1x8x8xf32>
    %cst_39 = arith.constant dense<0.000000e+00> : vector<1x8xf32>
    %62 = vector.multi_reduction <add>, %61, %cst_39 [2] : vector<1x8x8xf32> to vector<1x8xf32>
    %63 = vector.shape_cast %62 : vector<1x8xf32> to vector<1x8x1xf32>
    %64 = tpu.reciprocal %63 {approx = true} : vector<1x8x1xf32> -> vector<1x8x1xf32>
    %65 = vector.broadcast %64 : vector<1x8x1xf32> to vector<1x8x8xf32>
    %66 = arith.mulf %61, %65 : vector<1x8x8xf32>
    "tpu.trace_start"() <{level = 10 : i32, message = "bqk,bkd->bqd"}> : () -> ()
    %cst_40 = arith.constant dense<0.000000e+00> : vector<1x8x8xf32>
    %67 = tpu.matmul %66, %53, %cst_40 {dimension_numbers = #tpu.dot_dimension_numbers<[2], [1], [1], [2], [0, 0, 0, 1, 1, 2], [0], [0]>} : vector<1x8x8xf32>, vector<1x8x8xf32>, vector<1x8x8xf32> -> vector<1x8x8xf32>
    "tpu.trace_stop"() : () -> ()
    %c0_41 = arith.constant 0 : index
    %c0_42 = arith.constant 0 : index
    %c8 = arith.constant 8 : index
    %68 = vector.load %arg10[%c0_41, %c0_42, %c8] : memref<1x8x32xf32, #tpu.memory_space<vmem>>, vector<1x8x8xf32>
    tpu.vector_store %arg10[%c0_41, %c0_42, %c8], %67 {strides = array<i32>} : memref<1x8x32xf32, #tpu.memory_space<vmem>>, vector<1x8x8xf32>,
    %69 = vector.extract_strided_slice %11 {offsets = [0, 0, 16], sizes = [1, 8, 8], strides = [1, 1, 1]} : vector<1x8x32xf32> to vector<1x8x8xf32>
    %70 = vector.extract_strided_slice %21 {offsets = [0, 0, 16], sizes = [1, 8, 8], strides = [1, 1, 1]} : vector<1x8x32xf32> to vector<1x8x8xf32>
    %71 = vector.extract_strided_slice %31 {offsets = [0, 0, 16], sizes = [1, 8, 8], strides = [1, 1, 1]} : vector<1x8x32xf32> to vector<1x8x8xf32>
    "tpu.trace_start"() <{level = 10 : i32, message = "bqd,bkd->bqk"}> : () -> ()
    %cst_43 = arith.constant dense<0.000000e+00> : vector<1x8x8xf32>
    %72 = tpu.matmul %69, %70, %cst_43 {dimension_numbers = #tpu.dot_dimension_numbers<[2], [2], [1], [1], [0, 0, 0, 1, 1, 1], [0], [0]>} : vector<1x8x8xf32>, vector<1x8x8xf32>, vector<1x8x8xf32> -> vector<1x8x8xf32>
    "tpu.trace_stop"() : () -> ()
    %73 = vector.broadcast %32 : vector<1x1x8xf32> to vector<1x8x8xf32>
    %74 = arith.addf %72, %73 : vector<1x8x8xf32>
    %cst_44 = arith.constant dense<0xFF800000> : vector<1x8xf32>
    %75 = vector.multi_reduction <maximumf>, %74, %cst_44 [2] : vector<1x8x8xf32> to vector<1x8xf32>
    %76 = vector.shape_cast %75 : vector<1x8xf32> to vector<1x8x1xf32>
    %77 = vector.broadcast %76 : vector<1x8x1xf32> to vector<1x8x8xf32>
    %78 = arith.subf %74, %77 : vector<1x8x8xf32>
    %79 = math.exp %78 : vector<1x8x8xf32>
    %cst_45 = arith.constant dense<0.000000e+00> : vector<1x8xf32>
    %80 = vector.multi_reduction <add>, %79, %cst_45 [2] : vector<1x8x8xf32> to vector<1x8xf32>
    %81 = vector.shape_cast %80 : vector<1x8xf32> to vector<1x8x1xf32>
    %82 = tpu.reciprocal %81 {approx = true} : vector<1x8x1xf32> -> vector<1x8x1xf32>
    %83 = vector.broadcast %82 : vector<1x8x1xf32> to vector<1x8x8xf32>
    %84 = arith.mulf %79, %83 : vector<1x8x8xf32>
    "tpu.trace_start"() <{level = 10 : i32, message = "bqk,bkd->bqd"}> : () -> ()
    %cst_46 = arith.constant dense<0.000000e+00> : vector<1x8x8xf32>
    %85 = tpu.matmul %84, %71, %cst_46 {dimension_numbers = #tpu.dot_dimension_numbers<[2], [1], [1], [2], [0, 0, 0, 1, 1, 2], [0], [0]>} : vector<1x8x8xf32>, vector<1x8x8xf32>, vector<1x8x8xf32> -> vector<1x8x8xf32>
    "tpu.trace_stop"() : () -> ()
    %c0_47 = arith.constant 0 : index
    %c0_48 = arith.constant 0 : index
    %c16 = arith.constant 16 : index
    %86 = vector.load %arg10[%c0_47, %c0_48, %c16] : memref<1x8x32xf32, #tpu.memory_space<vmem>>, vector<1x8x8xf32>
    tpu.vector_store %arg10[%c0_47, %c0_48, %c16], %85 {strides = array<i32>} : memref<1x8x32xf32, #tpu.memory_space<vmem>>, vector<1x8x8xf32>,
    %87 = vector.extract_strided_slice %11 {offsets = [0, 0, 24], sizes = [1, 8, 8], strides = [1, 1, 1]} : vector<1x8x32xf32> to vector<1x8x8xf32>
    %88 = vector.extract_strided_slice %21 {offsets = [0, 0, 24], sizes = [1, 8, 8], strides = [1, 1, 1]} : vector<1x8x32xf32> to vector<1x8x8xf32>
    %89 = vector.extract_strided_slice %31 {offsets = [0, 0, 24], sizes = [1, 8, 8], strides = [1, 1, 1]} : vector<1x8x32xf32> to vector<1x8x8xf32>
    "tpu.trace_start"() <{level = 10 : i32, message = "bqd,bkd->bqk"}> : () -> ()
    %cst_49 = arith.constant dense<0.000000e+00> : vector<1x8x8xf32>
    %90 = tpu.matmul %87, %88, %cst_49 {dimension_numbers = #tpu.dot_dimension_numbers<[2], [2], [1], [1], [0, 0, 0, 1, 1, 1], [0], [0]>} : vector<1x8x8xf32>, vector<1x8x8xf32>, vector<1x8x8xf32> -> vector<1x8x8xf32>
    "tpu.trace_stop"() : () -> ()
    %91 = vector.broadcast %32 : vector<1x1x8xf32> to vector<1x8x8xf32>
    %92 = arith.addf %90, %91 : vector<1x8x8xf32>
    %cst_50 = arith.constant dense<0xFF800000> : vector<1x8xf32>
    %93 = vector.multi_reduction <maximumf>, %92, %cst_50 [2] : vector<1x8x8xf32> to vector<1x8xf32>
    %94 = vector.shape_cast %93 : vector<1x8xf32> to vector<1x8x1xf32>
    %95 = vector.broadcast %94 : vector<1x8x1xf32> to vector<1x8x8xf32>
    %96 = arith.subf %92, %95 : vector<1x8x8xf32>
    %97 = math.exp %96 : vector<1x8x8xf32>
    %cst_51 = arith.constant dense<0.000000e+00> : vector<1x8xf32>
    %98 = vector.multi_reduction <add>, %97, %cst_51 [2] : vector<1x8x8xf32> to vector<1x8xf32>
    %99 = vector.shape_cast %98 : vector<1x8xf32> to vector<1x8x1xf32>
    %100 = tpu.reciprocal %99 {approx = true} : vector<1x8x1xf32> -> vector<1x8x1xf32>
    %101 = vector.broadcast %100 : vector<1x8x1xf32> to vector<1x8x8xf32>
    %102 = arith.mulf %97, %101 : vector<1x8x8xf32>
    "tpu.trace_start"() <{level = 10 : i32, message = "bqk,bkd->bqd"}> : () -> ()
    %cst_52 = arith.constant dense<0.000000e+00> : vector<1x8x8xf32>
    %103 = tpu.matmul %102, %89, %cst_52 {dimension_numbers = #tpu.dot_dimension_numbers<[2], [1], [1], [2], [0, 0, 0, 1, 1, 2], [0], [0]>} : vector<1x8x8xf32>, vector<1x8x8xf32>, vector<1x8x8xf32> -> vector<1x8x8xf32>
    "tpu.trace_stop"() : () -> ()
    %c0_53 = arith.constant 0 : index
    %c0_54 = arith.constant 0 : index
    %c24 = arith.constant 24 : index
    %104 = vector.load %arg10[%c0_53, %c0_54, %c24] : memref<1x8x32xf32, #tpu.memory_space<vmem>>, vector<1x8x8xf32>
    tpu.vector_store %arg10[%c0_53, %c0_54, %c24], %103 {strides = array<i32>} : memref<1x8x32xf32, #tpu.memory_space<vmem>>, vector<1x8x8xf32>,
    %c0_55 = arith.constant 0 : index
    %c0_56 = arith.constant 0 : index
    %c0_57 = arith.constant 0 : index
    %105 = vector.load %arg10[%c0_55, %c0_56, %c0_57] : memref<1x8x32xf32, #tpu.memory_space<vmem>>, vector<1x8x32xf32>
    %106 = vector.shape_cast %105 : vector<1x8x32xf32> to vector<8x32xf32>
    %c0_58 = arith.constant 0 : index
    %c0_59 = arith.constant 0 : index
    %107 = vector.load %arg7[%c0_58, %c0_59] : memref<32x32xf32, #tpu.memory_space<vmem>>, vector<32x32xf32>
    %cst_60 = arith.constant dense<0.000000e+00> : vector<8x32xf32>
    %108 = tpu.matmul %106, %107, %cst_60 {dimension_numbers = #tpu.dot_dimension_numbers<[1], [0], [0], [1], [0, 0, 1, 1], [], []>} : vector<8x32xf32>, vector<32x32xf32>, vector<8x32xf32> -> vector<8x32xf32>
    %c0_61 = arith.constant 0 : index
    %c0_62 = arith.constant 0 : index
    %109 = vector.load %arg8[%c0_61, %c0_62] : memref<1x32xf32, #tpu.memory_space<vmem>>, vector<1x32xf32>
    %110 = vector.broadcast %109 : vector<1x32xf32> to vector<8x32xf32>
    %111 = arith.addf %108, %110 : vector<8x32xf32>
    %112 = vector.shape_cast %111 : vector<8x32xf32> to vector<1x8x32xf32>
    %c0_63 = arith.constant 0 : index
    %c0_64 = arith.constant 0 : index
    %c0_65 = arith.constant 0 : index
    %113 = vector.load %arg9[%c0_63, %c0_64, %c0_65] : memref<1x8x32xf32, #tpu.memory_space<vmem>>, vector<1x8x32xf32>
    tpu.vector_store %arg9[%c0_63, %c0_64, %c0_65], %112 {strides = array<i32>} : memref<1x8x32xf32, #tpu.memory_space<vmem>>, vector<1x8x32xf32>,
    return
  }
  func.func @transform_0(%arg0: i32) -> (i32, i32, i32) {
    %c0_i32 = arith.constant 0 : i32
    %c0_i32_0 = arith.constant 0 : i32
    %c0_i32_1 = arith.constant 0 : i32
    return %arg0, %c0_i32, %c0_i32_0 : i32, i32, i32
  }
  func.func @transform_1(%arg0: i32) -> (i32, i32, i32) {
    %c0_i32 = arith.constant 0 : i32
    %c0_i32_0 = arith.constant 0 : i32
    %c0_i32_1 = arith.constant 0 : i32
    return %arg0, %c0_i32, %c0_i32_0 : i32, i32, i32
  }
  func.func @transform_2(%arg0: i32) -> (i32, i32, i32) {
    %c0_i32 = arith.constant 0 : i32
    %c0_i32_0 = arith.constant 0 : i32
    %c0_i32_1 = arith.constant 0 : i32
    return %arg0, %c0_i32, %c0_i32_0 : i32, i32, i32
  }
  func.func @transform_3(%arg0: i32) -> (i32, i32, i32) {
    %c0_i32 = arith.constant 0 : i32
    %c0_i32_0 = arith.constant 0 : i32
    %c0_i32_1 = arith.constant 0 : i32
    return %arg0, %c0_i32, %c0_i32_0 : i32, i32, i32
  }
  func.func @transform_4(%arg0: i32) -> (i32, i32, i32) {
    %c0_i32 = arith.constant 0 : i32
    %c0_i32_0 = arith.constant 0 : i32
    %c0_i32_1 = arith.constant 0 : i32
    %c0_i32_2 = arith.constant 0 : i32
    return %c0_i32, %c0_i32_0, %c0_i32_1 : i32, i32, i32
  }
  func.func @transform_5(%arg0: i32) -> (i32, i32, i32) {
    %c0_i32 = arith.constant 0 : i32
    %c0_i32_0 = arith.constant 0 : i32
    %c0_i32_1 = arith.constant 0 : i32
    %c0_i32_2 = arith.constant 0 : i32
    return %c0_i32, %c0_i32_0, %c0_i32_1 : i32, i32, i32
  }
  func.func @transform_6(%arg0: i32) -> (i32, i32) {
    %c0_i32 = arith.constant 0 : i32
    %c0_i32_0 = arith.constant 0 : i32
    %c0_i32_1 = arith.constant 0 : i32
    return %c0_i32, %c0_i32_0 : i32, i32
  }
  func.func @transform_7(%arg0: i32) -> (i32, i32) {
    %c0_i32 = arith.constant 0 : i32
    %c0_i32_0 = arith.constant 0 : i32
    %c0_i32_1 = arith.constant 0 : i32
    return %c0_i32, %c0_i32_0 : i32, i32
  }
  func.func @transform_8(%arg0: i32) -> (i32, i32, i32) {
    %c0_i32 = arith.constant 0 : i32
    %c0_i32_0 = arith.constant 0 : i32
    %c0_i32_1 = arith.constant 0 : i32
    return %arg0, %c0_i32, %c0_i32_0 : i32, i32, i32
  }
}

</mosaic_0001>

<bundles_post_ra>
// kernel: tpu_custom_call.1
= control target key start
LH: loop header
LB: loop body
LE: loop exit
PB: predicated region body
PF: predicated region fallthrough
CT: control target
= control target key end

     0   :  { %s2522_s0 = inlined_call_operand.hbm [shape: f32[2,8,32], index: 0, kind: input, shape index: {}]   ;;  %s2523_s1 = inlined_call_operand.hbm [shape: f32[2,8,32], index: 1, kind: input, shape index: {}]   ;;  %s2524_s2 = inlined_call_operand.hbm [shape: f32[2,8,32], index: 2, kind: input, shape index: {}]   ;;  %s2525_s3 = inlined_call_operand.vmem [shape: f32[2,1,8], index: 3, kind: input, shape index: {}]   ;;  %s2526_s4 = inlined_call_operand.hbm [shape: f32[3,32,32], index: 4, kind: input, shape index: {}]   ;;  %s2527_s5 = inlined_call_operand.vmem [shape: f32[3,1,32], index: 5, kind: input, shape index: {}]   ;;  %s2528_s6 = inlined_call_operand.hbm [shape: f32[32,32], index: 6, kind: input, shape index: {}]   ;;  %s2529_s7 = inlined_call_operand.vmem [shape: f32[1,32], index: 7, kind: input, shape index: {}]   ;;  %s2530_s8 = inlined_call_operand.hbm [shape: f32[2,8,32], index: 8, kind: output, shape index: {}]  }
   0x1   :  { %2547 = sst [smem:[#allocation22_spill]] %s2522_s0 }
   0x2   :  { %2548 = sst [smem:[#allocation23_spill]] %s2526_s4 }
   0x3   :  { %2549 = sst [smem:[#allocation24_spill]] %s2530_s8 }
   0x4   :  { %13 = vsyncpa [#allocation4], 0 }
   0x5   :  { %15 = vsyncpa [#allocation4 + $0x1], 0 }
   0x6   :  { %16 = vsyncpa [#allocation7], 0 }
   0x7   :  { %18 = vsyncpa [#allocation7 + $0x1], 0 }
   0x8   :  { %19 = vsyncpa [#allocation10], 0 }
   0x9   :  { %20 = vsyncpa [#allocation5], 0 }
   0xa   :  { %22 = vsyncpa [#allocation5 + $0x1], 0  ;;  %s2159_s27 = smov 0   ;;  %s2161_s28 = smov 0  }
   0xb   :  { %s2163_s29 = smov 0   ;;  %s2165_s30 = smov 0  }
   0xc LB: > { %2550 = sst [smem:[#allocation17_spill]] %s2084_s27  ;;  %s2180_s9 = sadd.s32 4294967295, %s2096_s30   ;;  %s2096_s30 = sphi %s2165_s30, %s2580_s30   ;;  %s2092_s29 = sphi %s2163_s29, %s2584_s29   ;;  %s2088_s28 = sphi %s2161_s28, %s2583_s28   ;;  %s2084_s27 = sphi %s2159_s27, %s2582_s27  }
   0xd   : > { %2551 = sst [smem:[#allocation18_spill]] %s2096_s30  ;;  %s1620_s10 = sadd.s32 4294967294, %s2096_s30  }
   0xe   : > { %p48_p0 = scmp.ne.s32.totalorder %s2088_s28, %s2084_s27  ;;  %p2537_p1 = scmp.eq.s32.totalorder %s2180_s9, 0 }
   0xf   : > { %p234_p2 = scmp.eq.s32.totalorder %s2180_s9, 1  ;;  %p240_p3 = scmp.eq.s32.totalorder %s1620_s10, 1 }
  0x10   : > { %p2189_p4 = por %p2537_p1, %p48_p0  ;;  %p1621_p5 = scmp.ge.s32.totalorder %s2096_s30, 1 }
  0x11   : > { %p2194_p6 = por %p240_p3, %p48_p0  ;;  %p247_p7 = scmp.lt.s32.totalorder %s2096_s30, 3 }
  0x12   : > { %s2552_s11 = scalar_select %p2189_p4, 1, 0 }
  0x13   : > { %s2553_s12 = scalar_select %p2194_p6, 1, 0 }
  0x14   : > { %p2199_p8 = pnand %p1621_p5, %p247_p7  ;;  %s2098_s14 = smov [#allocation9]  }
  0x15   : > { %2554 = sst [smem:[#allocation19_spill]] %s2553_s12  ;;  %s259_s15 = sshll.u32 %s2098_s14, 4  ;;  %s260_s15 = int_to_ptr.vmem [resolvable:$true] %s259_s15 }
  0x16   : > { %s2555_s13 = scalar_select %p2199_p8, 1, 0 }
  0x17   : > { %p1801_p9 = pneg %p2199_p8  ;;  %s2213_s17 = sadd.s32 1, %s2096_s30  }
  0x18   : > { %2557 = sst [smem:[#allocation20_spill]] %s2213_s17  ;;  %s35_s18 = sadd.s32 1, %s2092_s29 }
  0x19   : > { %p2208_p11 = pnand %p1801_p9, %p2537_p1  ;;  %s32_s19 = ssub.s32 %s2096_s30, %s2213_s17 }
  0x1a   : > { %s1899_s20 = scalar_lea.vmem %s260_s15, 1536  ;;  %p1907_p5 = scmp.lt.s32.totalorder %s260_s15, %s260_s15 }
  0x1b   : > { %s2556_s16 = scalar_select %p2208_p11, 1, 0 }
  0x1c   : > { %p2538_p12 = pneg %p2208_p11  ;;  %p1900_p13 = scmp.ne.s32.totalorder %s260_s15, %s1899_s20 }
  0x1d   : > { %p1908_p7 = scmp.lt.s32.totalorder %s1899_s20, %s1899_s20 }
  0x1e   : > { %p1902_p0 = pnand %p1900_p13, %p2538_p12 }
  0x1f   : > { %p1909_p9 = por %p1908_p7, %p1907_p5 }
  0x20   : > { %p1903_p3 = pneg %p1902_p0 }
  0x22   : > { %p1910_p10 = pnand %p1909_p9, %p1903_p3 }
  0x24   : > { %1913 = shalt.err (!%p1910_p10)
}
  0x25   : > { %s2531_s21 = smov 128   ;;  %s2532_s22 = smov 8  }
  0x26   : > { %s2558_s4 = sld [smem:[#allocation23_spill]]  ;;  %p33_p10 = scmp.eq.s32.totalorder %s32_s19, 0 }
  0x27   : > { %p42_p13 = scmp.ne.s32.totalorder %s2092_s29, %s2088_s28  ;;  %p43_p0 = scmp.eq.s32.totalorder %s2096_s30, 0 }
  0x28   : > { %p1824_p3 = scmp.lt.s32.totalorder %s2096_s30, 2  ;;  %s2533_s10 = sand.u32 1, %s2092_s29  }
  0x29   : > { %s2236_s25 = scalar_select %p33_p10, %s2092_s29, %s35_s18  }
  0x2a   : > { %p44_p5 = por %p43_p0, %p42_p13  ;;  %p2240_p7 = por %p234_p2, %p42_p13 }
  0x2b   : > { %2559 = sst [smem:[#allocation21_spill]] %s2236_s25  ;;  %s2246_s14 = sshll.u32 %s2096_s30, 7 }
  0x2c   : > { %1804 = dma.hbm_to_vmem [thread:$0]  (!%p2208_p11), %s2558_s4, 1536, %s260_s15, [#allocation10], %s2531_s21, %s2531_s21, %s2532_s22  }
  0x2d   : > { %s2560_s26 = scalar_select %p2240_p7, 1, 0 }
  0x2e   : > { %s2250_s20 = sshll.u32 %s2533_s10, 3  ;;  %p2252_p9 = pnand %p1824_p3, %p44_p5 }
  0x2f   : > { %s310_s18 = sand.u32 1, %s2096_s30   ;;  %s2261_s24 = scalar_lea.hbm %s2523_s1, %s2246_s14 }
  0x30   : > { %s314_s21 = scalar_lea.vmem [#allocation6], %s2250_s20  ;;  %s2264_s10 = scalar_lea.sflag [#allocation7], %s310_s18 }
  0x31   : > { %s321_s22 = sshll.u32 %s314_s21, 4  ;;  %s1914_s4 = scalar_lea.hbm %s2261_s24, 128  ;;  %s322_s22 = int_to_ptr.vmem [resolvable:$true] %s321_s22 }
  0x32   : > { %p1915_p2 = scmp.ne.s32.totalorder %s2261_s24, %s1914_s4  ;;  %p2270_p10 = pneg %p2252_p9 }
  0x33   : > { %s1919_s17 = scalar_lea.hbm %s2523_s1, 256  ;;  %p1920_p3 = scmp.lt.s32.totalorder %s2261_s24, %s2523_s1 }
  0x34   : > { %p1917_p13 = pnand %p2270_p10, %p1915_p2  ;;  %p1921_p5 = scmp.lt.s32.totalorder %s1919_s17, %s1914_s4 }
  0x36   : > { %p1918_p0 = pneg %p1917_p13  ;;  %p1922_p1 = por %p1921_p5, %p1920_p3 }
  0x38   : > { %p1923_p12 = pnand %p1922_p1, %p1918_p0 }
  0x3a   : > { %1926 = shalt.err (!%p1923_p12)
}
  0x3b   : > { %s1927_s18 = scalar_lea.vmem %s322_s22, 128  ;;  %s2101_s12 = smov [#allocation6]  }
  0x3c   : > { %p1928_p6 = scmp.ne.s32.totalorder %s322_s22, %s1927_s18  ;;  %s1932_s27 = sshll.u32 %s2101_s12, 4  ;;  %s1933_s27 = int_to_ptr.vmem [resolvable:$false] %s1932_s27 }
  0x3d   : > { %s1934_s8 = scalar_lea.vmem %s1933_s27, 256  ;;  %p1935_p2 = scmp.lt.s32.totalorder %s322_s22, %s1933_s27 }
  0x3e   : > { %p1930_p7 = pnand %p1928_p6, %p2270_p10  ;;  %p1936_p13 = scmp.lt.s32.totalorder %s1934_s8, %s1927_s18 }
  0x40   : > { %p1931_p4 = pneg %p1930_p7  ;;  %p1937_p8 = por %p1936_p13, %p1935_p2 }
  0x42   : > { %p1938_p11 = pnand %p1937_p8, %p1931_p4 }
  0x44   : > { %1941 = shalt.err (!%p1938_p11)
}
  0x45   : > { %1814 = dma.hbm_to_vmem [thread:$0]  (!%p2252_p9), %s2261_s24, 128, %s322_s22, %s2264_s10  }
  0x46   : > { %s2102_s4 = smov [#allocation11]   ;;  %p2563_p6 = scmp.ne.s32.totalorder %s2556_s16, 0 }
  0x47   : > { %s275_s30 = sshll.u32 %s2102_s4, 4  ;;  %s276_s30 = int_to_ptr.vmem [resolvable:$true] %s275_s30 }
  0x48   : > { %s1953_s17 = scalar_lea.vmem %s276_s30, 512  ;;  %p2564_p12 = pneg %p2563_p6 }
  0x49   : > { %p1954_p1 = scmp.ne.s32.totalorder %s276_s30, %s1953_s17  ;;  %p1961_p3 = scmp.lt.s32.totalorder %s276_s30, %s276_s30 }
  0x4a   : > { %p1962_p5 = scmp.lt.s32.totalorder %s1953_s17, %s1953_s17 }
  0x4b   : > { %p1956_p7 = pnand %p1954_p1, %p2564_p12 }
  0x4c   : > { %p1963_p2 = por %p1962_p5, %p1961_p3 }
  0x4d   : > { %p1957_p0 = pneg %p1956_p7 }
  0x4f   : > { %p1964_p4 = pnand %p1963_p2, %p1957_p0 }
  0x51   : > { %1967 = shalt.err (!%p1964_p4)
}
  0x52   : > { %s2565_s8 = smov 8   ;;  %s2566_s27 = smov 128  }
  0x53   : > { %1807 = dma.hbm_to_vmem [thread:$0]  (!%p2563_p6), %s2528_s6, 512, %s276_s30, [#allocation10], %s2566_s27, %s2566_s27, %s2565_s8  }
  0x54   : > { %s2567_s0 = sld [smem:[#allocation22_spill]]  ;;  %s296_s16 = scalar_lea.vmem [#allocation3], %s2250_s20 }
  0x55   : > { %s303_s21 = sshll.u32 %s296_s16, 4  ;;  %s2568_s18 = sand.u32 1, %s2092_s29   ;;  %s304_s21 = int_to_ptr.vmem [resolvable:$true] %s303_s21 }
  0x56   : > { %s293_s4 = scalar_lea.sflag [#allocation4], %s2568_s18 }
  0x5a   : > { %s2304_s23 = scalar_lea.hbm %s2567_s0, %s2246_s14  ;;  %s1973_s8 = scalar_lea.hbm %s2567_s0, 256 }
  0x5b   : > { %s1968_s17 = scalar_lea.hbm %s2304_s23, 128  ;;  %p1974_p1 = scmp.lt.s32.totalorder %s2304_s23, %s2567_s0 }
  0x5c   : > { %p1969_p8 = scmp.ne.s32.totalorder %s2304_s23, %s1968_s17  ;;  %p1975_p6 = scmp.lt.s32.totalorder %s1973_s8, %s1968_s17 }
  0x5e   : > { %p1971_p11 = pnand %p1969_p8, %p2270_p10  ;;  %p1976_p12 = por %p1975_p6, %p1974_p1 }
  0x60   : > { %p1972_p13 = pneg %p1971_p11 }
  0x62   : > { %p1977_p7 = pnand %p1976_p12, %p1972_p13 }
  0x64   : > { %1980 = shalt.err (!%p1977_p7)
}
  0x65   : > { %s1981_s24 = scalar_lea.vmem %s304_s21, 128  ;;  %s2103_s19 = smov [#allocation3]  }
  0x66   : > { %p1982_p0 = scmp.ne.s32.totalorder %s304_s21, %s1981_s24  ;;  %s1986_s16 = sshll.u32 %s2103_s19, 4  ;;  %s1987_s16 = int_to_ptr.vmem [resolvable:$false] %s1986_s16 }
  0x67   : > { %s1988_s18 = scalar_lea.vmem %s1987_s16, 256  ;;  %p1989_p2 = scmp.lt.s32.totalorder %s304_s21, %s1987_s16 }
  0x68   : > { %p1984_p3 = pnand %p1982_p0, %p2270_p10  ;;  %p1990_p4 = scmp.lt.s32.totalorder %s1988_s18, %s1981_s24 }
  0x6a   : > { %p1985_p5 = pneg %p1984_p3  ;;  %p1991_p8 = por %p1990_p4, %p1989_p2 }
  0x6c   : > { %p1992_p11 = pnand %p1991_p8, %p1985_p5 }
  0x6e   : > { %1995 = shalt.err (!%p1992_p11)
}
  0x6f   : > { %1811 = dma.hbm_to_vmem [thread:$0]  (!%p2252_p9), %s2304_s23, 128, %s304_s21, %s293_s4  }
  0x70   : > { %s337_s30 = scalar_lea.hbm %s2524_s2, %s2246_s14  ;;  %s332_s8 = scalar_lea.vmem [#allocation8], %s2250_s20 }
  0x71   : > { %s339_s27 = sshll.u32 %s332_s8, 4  ;;  %s1996_s22 = scalar_lea.hbm %s337_s30, 128  ;;  %s340_s27 = int_to_ptr.vmem [resolvable:$true] %s339_s27 }
  0x72   : > { %p1997_p13 = scmp.ne.s32.totalorder %s337_s30, %s1996_s22  ;;  %s2001_s16 = scalar_lea.hbm %s2524_s2, 256 }
  0x73   : > { %p2002_p12 = scmp.lt.s32.totalorder %s337_s30, %s2524_s2  ;;  %p2003_p7 = scmp.lt.s32.totalorder %s2001_s16, %s1996_s22 }
  0x74   : > { %p1999_p1 = pnand %p1997_p13, %p2270_p10 }
  0x75   : > { %p2004_p0 = por %p2003_p7, %p2002_p12 }
  0x76   : > { %p2000_p6 = pneg %p1999_p1 }
  0x78   : > { %p2005_p3 = pnand %p2004_p0, %p2000_p6 }
  0x7a   : > { %2008 = shalt.err (!%p2005_p3)
}
  0x7b   : > { %s2009_s14 = scalar_lea.vmem %s340_s27, 128  ;;  %s2104_s20 = smov [#allocation8]  }
  0x7c   : > { %p2010_p5 = scmp.ne.s32.totalorder %s340_s27, %s2009_s14  ;;  %s2014_s23 = sshll.u32 %s2104_s20, 4  ;;  %s2015_s23 = int_to_ptr.vmem [resolvable:$false] %s2014_s23 }
  0x7d   : > { %s2016_s21 = scalar_lea.vmem %s2015_s23, 256  ;;  %p2017_p8 = scmp.lt.s32.totalorder %s340_s27, %s2015_s23 }
  0x7e   : > { %p2012_p2 = pnand %p2010_p5, %p2270_p10  ;;  %p2018_p11 = scmp.lt.s32.totalorder %s2016_s21, %s2009_s14 }
  0x80   : > { %p2013_p4 = pneg %p2012_p2  ;;  %p2019_p13 = por %p2018_p11, %p2017_p8 }
  0x82   : > { %p2020_p1 = pnand %p2019_p13, %p2013_p4 }
  0x84   : > { %2023 = shalt.err (!%p2020_p1)
}
  0x85   : > { %1817 = dma.hbm_to_vmem [thread:$0]  (!%p2252_p9), %s337_s30, 128, %s340_s27, %s2264_s10  }
  0x86   : > { %p2569_p6 = scmp.ne.s32.totalorder %s2555_s13, 0 }
  0x87   : > { %s2346_s0 = sand.u32 (!%p2569_p6), 1, %s2088_s28   ;;  %p2570_p10 = scmp.ne.s32.totalorder (!%p2569_p6), %s2552_s11, 0 }
  0x88   : > { %354 = sbr.rel (%p2569_p6) target bundleno = 1963 (0x7ab), region = 52  ;;  %s2349_s25 = sshll.u32 (!%p2569_p6), %s2346_s0, 3 }
  0x89   : > { %s357_s4 = scalar_lea.sflag (!%p2569_p6), [#allocation4], %s2346_s0  ;;  %s360_s17 = scalar_lea.vmem (!%p2569_p6), [#allocation3], %s2349_s25 }
  0x8d   : > { %2067 = dma.done.wait (%p2570_p10), %s357_s4, 128  }
  0x8e   : > { %2069 = vsyncadd (%p2570_p10), %s357_s4, 4294967168  ;;  %s365_s13 = sand.u32 1, %s2180_s9   ;;  %s369_s15 = scalar_lea.vmem [#allocation6], %s2349_s25 }
  0x8f   : > { %s366_s10 = scalar_lea.sflag [#allocation7], %s365_s13 }
  0x90   : > { %2071 = dma.done.wait (%p2570_p10), %s366_s10, 256  }
  0x91   : > { %2073 = vsyncadd (%p2570_p10), %s366_s10, 4294967040  ;;  %s378_s12 = scalar_lea.vmem [#allocation8], %s2349_s25  ;;  %p2571_p9 = scmp.eq.s32.totalorder %s2180_s9, 0 }
  0x93   : > { %2075 = dma.done.wait (%p2571_p9), [#allocation10], 2048   ;;  %p2572_p12 = pmov %p2571_p9 }
  0x94   : > { %v2105_v0 = vmov 0.0   ;;  %vm2106_vm0 = vmmov 0   ;;  %v439_v1 = vld [vmem:[#allocation9 + $0x18] sm:$0xff]  ;;  %v438_v3 = vld [vmem:[#allocation9 + $0x10] sm:$0xff]  ;;  %v437_v5 = vld [vmem:[#allocation9 + $0x8] sm:$0xff]  ;;  %vm447_vm1 = vcmask 261120  }
  0x95   : > { %2077 = vsyncadd (%p2572_p12), [#allocation10], 4294965248  ;;  %1701 = vmatprep.subr.mxu0 %v2105_v0  ;;  %1712 = vmatprep.subr.mxu1 %v2105_v0  ;;  %v527_v2 = vld [vmem:[#allocation9 + $0x38] sm:$0xff]  ;;  %v526_v4 = vld [vmem:[#allocation9 + $0x30] sm:$0xff]  ;;  %vm703_vm2 = vcmask 64512   ;;  %s2107_s22 = smov 120  }
  0x96   : > { %1709 = vmatprep.mubr.msk.f32.mxu0 %vm2106_vm0, %v2105_v0  ;;  %1720 = vmatprep.mubr.msk.f32.mxu1 %vm2106_vm0, %v2105_v0  ;;  %v525_v6 = vld [vmem:[#allocation9 + $0x28] sm:$0xff]  ;;  %v436_v7 = vld [vmem:[#allocation9] sm:$0xff]  ;;  %v435_v9 = vld [vmem:[%s360_s17] sm:$0xff]  ;;  %s2108_s24 = smov 112   ;;  %s2109_s19 = smov 104   ;;  %vm1035_vm3 = vcmask 130112  }
  0x97   : > { %1702 = vmatpush3.msra.mxu0 %v439_v1  ;;  %1713 = vmatpush3.msra.mxu1 %v527_v2  ;;  %v524_v8 = vld [vmem:[#allocation9 + $0x20] sm:$0xff]  ;;  %v1638_v11 = vld [vmem:[%s2527_s5] ss:$0 sm:$0xff]  ;;  %v1641_v12 = vld [vmem:[%s2527_s5 + $0x1] ss:$0 sm:$0xff]  ;;  %p432_p7 = scmp.lt.s32.totalorder %s2180_s9, 1 }
  0x98   : > { %1703 = vmatprep.subr.mxu0 %v2105_v0  ;;  %1714 = vmatprep.subr.mxu1 %v2105_v0  ;;  %v522_v10 = vld [vmem:[%s369_s15] sm:$0xff]  ;;  %v614_v20 = vld [vmem:[#allocation9 + $0x58] sm:$0xff]  ;;  %v613_v21 = vld [vmem:[#allocation9 + $0x50] sm:$0xff]  ;;  %s2110_s4 = smov 8   ;;  %s2111_s17 = smov 16   ;;  %vm1206_vm4 = vcmask 195712  }
  0x99   : > { %1704 = vmatpush3.msra.mxu0 %v438_v3  ;;  %1715 = vmatpush3.msra.mxu1 %v526_v4  ;;  %v612_v22 = vld [vmem:[#allocation9 + $0x48] sm:$0xff]  ;;  %v611_v23 = vld [vmem:[#allocation9 + $0x40] sm:$0xff]  ;;  %v609_v24 = vld [vmem:[%s378_s12] sm:$0xff]  ;;  %s433_s16 = scalar_select %p432_p7, %s2180_s9, 1  ;;  %vm1377_vm5 = vcmask 261312  }
  0x9a   : > { %1705 = vmatprep.subr.mxu0 %v2105_v0  ;;  %1716 = vmatprep.subr.mxu1 %v2105_v0  ;;  %v1644_v35 = vld [vmem:[%s2527_s5 + $0x2] ss:$0 sm:$0xff]  ;;  %s2112_s13 = smov 24   ;;  %s1662_s12 = sshll.u32 %s2180_s9, 7 }
  0x9b   : > { %1706 = vmatpush3.msra.mxu0 %v437_v5  ;;  %1717 = vmatpush3.msra.mxu1 %v525_v6  ;;  %s434_s20 = scalar_lea.vmem %s2525_s3, %s433_s16  ;;  %s431_s11 = scalar_lea.vmem [#allocation12], %s2349_s25 }
  0x9c   : > { %1707 = vmatprep.subr.mxu0 %v2105_v0  ;;  %1718 = vmatprep.subr.mxu1 %v2105_v0  ;;  %v1646_v25 = vld [vmem:[%s434_s20] ss:$0 sm:$0xff]  ;;  %s1479_s30 = sshll.u32 %s431_s11, 4  ;;  %p2574_p3 = scmp.ne.s32.totalorder %s2560_s26, 0  ;;  %s1480_s30 = int_to_ptr.vmem [resolvable:$true] %s1479_s30 }
  0x9d   : > { %1708 = vmatpush3.msra.mxu0 %v436_v7  ;;  %1719 = vmatpush3.msra.mxu1 %v524_v8  ;;  %s2024_s16 = scalar_lea.vmem %s1480_s30, 128  ;;  %s2113_s9 = smov [#allocation12]  }
  0x9e   : > { %1710 = vmatmul.mubr.msk.f32.vlgmr.msra.gmra.mxu0 %vm447_vm1, %v435_v9  ;;  %1721 = vmatmul.mubr.msk.f32.vlgmr.msra.gmra.mxu1 %vm447_vm1, %v522_v10  ;;  %p2025_p0 = scmp.ne.s32.totalorder %s1480_s30, %s2024_s16  ;;  %s2028_s25 = sshll.u32 %s2113_s9, 4  ;;  %s2029_s25 = int_to_ptr.vmem [resolvable:$false] %s2028_s25 }
  0x9f   : > { %1734 = vmatprep.subr.mxu1 %v2105_v0  ;;  %1736 = vmatprep.mubr.msk.f32.mxu1 %vm2106_vm0, %v2105_v0  ;;  %s2030_s18 = scalar_lea.vmem %s2029_s25, 256  ;;  %p2031_p4 = scmp.lt.s32.totalorder %s1480_s30, %s2029_s25 }
  0xa0   : > { %1723 = vmatprep.subr.mxu0 %v2105_v0  ;;  %1731 = vmatprep.mubr.msk.f32.mxu0 %vm2106_vm0, %v2105_v0  ;;  %p2026_p5 = pnand %p2025_p0, %p2574_p3  ;;  %p2032_p8 = scmp.lt.s32.totalorder %s2030_s18, %s2024_s16 }
  0xa1   : > { %1724 = vmatpush3.msra.mxu0 %v614_v20 }
  0xa2   : > { %1725 = vmatprep.subr.mxu0 %v2105_v0  ;;  %p2027_p2 = pneg %p2026_p5  ;;  %p2033_p11 = por %p2032_p8, %p2031_p4 }
  0xa3   : > { %1726 = vmatpush3.msra.mxu0 %v613_v21 }
  0xa4   : > { %1727 = vmatprep.subr.mxu0 %v2105_v0  ;;  %p2034_p13 = pnand %p2033_p11, %p2027_p2 }
  0xa5   : > { %1728 = vmatpush3.msra.mxu0 %v612_v22 }
  0xa6   : > { %1729 = vmatprep.subr.mxu0 %v2105_v0 }
  0xa7   : > { %1730 = vmatpush3.msra.mxu0 %v611_v23 }
  0xa8   : > { %1732 = vmatmul.mubr.msk.f32.vlgmr.msra.gmra.mxu0 %vm447_vm1, %v609_v24  ;;  %1754 = vmatprep.subr.mxu0 %v2105_v0 }
  0xa9   : > { %1756 = vmatprep.mubr.msk.f32.mxu0 %vm2106_vm0, %v2105_v0 }
 0x15e   : > { %v517_v13 = vpop.f32.mrf.mxu0  ;;  %v605_v14 = vpop.f32.mrf.mxu1 }
 0x15f   : > { %v518_v15 = vadd.f32 %v1638_v11, %v517_v13  ;;  %v606_v16 = vadd.f32 %v1641_v12, %v605_v14 }
 0x160   : > { %v1711_v17 = vpop.f32.mrf.mxu0  ;;  %v1722_v18 = vpop.f32.mrf.mxu1 }
 0x161   : > { %v521_v19 = vmul.f32 0.35355338, %v518_v15  ;;  %867 = vrot.lane.b32.xlu1 %v606_v16, %s2107_s22  ;;  %1735 = vmatpush3.xpose.msk.msra.mxu1 %vm703_vm2, %v606_v16 }
 0x162   : > { %1739 = vmatprep.subr.mxu1 %v2105_v0 }
 0x164   : > { %1737 = vmatmul.mubr.msk.f32.vlgmr.msra.gmra.mxu1 %vm703_vm2, %v521_v19 }
 0x165   : > { %865 = vrot.lane.b32.xlu1 %v521_v19, %s2107_s22  ;;  %1741 = vmatprep.mubr.msk.f32.mxu1 %vm2106_vm0, %v2105_v0 }
 0x168   : > { %v692_v36 = vpop.f32.mrf.mxu0 }
 0x169   : > { %1037 = vrot.lane.b32.xlu1 %v521_v19, %s2108_s24  ;;  %v2427_v37 = vadd.f32 %v1644_v35, %v692_v36 }
 0x16a   : > { %v1733_v38 = vpop.f32.mrf.mxu0 }
 0x16b   : > { %1740 = vmatpush3.msra.mxu1 %v2427_v37 }
 0x16c   : > { %1744 = vmatprep.subr.mxu1 %v2105_v0 }
 0x16d   : > { %1210 = vrot.lane.b32.xlu1 %v606_v16, %s2109_s19 }
 0x171   : > { %1208 = vrot.lane.b32.xlu1 %v521_v19, %s2109_s19 }
 0x1d3   : > { %v868_v39 = vpop.permute.xlu1 %867 }
 0x1d7   : > { %v866_v40 = vpop.permute.xlu1 %865 }
 0x1db   : > { %v1038_v41 = vpop.permute.xlu1 %1037 }
 0x1df   : > { %v1211_v44 = vpop.permute.xlu1 %1210 }
 0x1e3   : > { %v1209_v45 = vpop.permute.xlu1 %1208 }
 0x224   : > { %v776_v26 = vpop.f32.mrf.mxu1 }
 0x225   : > { %v777_v27 = vadd.f32 %v1646_v25, %v776_v26  ;;  %v1383_v26 = vld [vmem:[#allocation11 + $0x18] sm:$0xff] }
 0x226   : > { %v1738_v28 = vpop.f32.mrf.mxu1 }
 0x227   : > { %v780_v29 = vsel %vm703_vm2, %v777_v27, -inf  ;;  %v1381_v28 = vld [vmem:[#allocation11 + $0x8] sm:$0xff] }
 0x228   : > { %781 = vmax.xlane.f32.xlu0 %v780_v29 }
 0x2b1   : > { %v782_v30 = vpop.xlane.xlu0 %781 }
 0x2b2   : > { %v783_v31 = vsub.f32 %v777_v27, %v782_v30  ;;  %v1382_v27 = vld [vmem:[#allocation11 + $0x10] sm:$0xff]  ;;  %v1380_v30 = vld [vmem:[#allocation11] sm:$0xff] }
 0x2b4   : > { %v784_v32 = vmul.f32 1.442695, %v783_v31 }
 0x2b6   : > { %1872 = vpow2.f32 %v784_v32 }
 0x2c3   : > { %v1873_v33 = vpop.eup %1872 }
 0x2c4   : > { %v786_v34 = vsel %vm703_vm2, %v1873_v33, 0.0 }
 0x2c5   : > { %787 = vadd.xlane.f32.xlu0 %v786_v34 }
 0x2db   : > { %1039 = vrot.lane.b32.xlu0 %v606_v16, %s2108_s24 }
 0x34e   : > { %v788_v42 = vpop.xlane.xlu0 %787 }
 0x34f   : > { %1874 = vrcp.f32 %v788_v42 }
 0x352   : > { %v1040_v43 = vpop.permute.xlu0 %1039 }
 0x353   : > { %1755 = vmatpush3.xpose.msk.msra.mxu0 %vm703_vm2, %v1040_v43 }
 0x354   : > { %1764 = vmatprep.subr.mxu0 %v2105_v0 }
 0x356   : > { %1757 = vmatmul.mubr.msk.f32.vlgmr.msra.gmra.mxu0 %vm703_vm2, %v1038_v41 }
 0x357   : > { %1765 = vmatpush3.xpose.msk.msra.mxu0 %vm703_vm2, %v1211_v44  ;;  %1766 = vmatprep.mubr.msk.f32.mxu0 %vm2106_vm0, %v2105_v0 }
 0x358   : > { %1774 = vmatprep.subr.mxu0 %v2105_v0 }
 0x35a   : > { %1767 = vmatmul.mubr.msk.f32.vlgmr.msra.gmra.mxu0 %vm703_vm2, %v1209_v45 }
 0x35b   : > { %1782 = vmatprep.mubr.msk.f32.mxu0 %vm2106_vm0, %v2105_v0  ;;  %1775 = vmatpush3.msra.mxu0 %v1383_v26 }
 0x35c   : > { %v1875_v46 = vpop.eup %1874  ;;  %1776 = vmatprep.subr.mxu0 %v2105_v0 }
 0x35d   : > { %v790_v47 = vmul.f32 %v1875_v46, %v1873_v33  ;;  %1777 = vmatpush3.msra.mxu0 %v1382_v27 }
 0x35e   : > { %1778 = vmatprep.subr.mxu0 %v2105_v0 }
 0x35f   : > { %1742 = vmatmul.mubr.msk.f32.vlgmr.msra.gmra.mxu1 %vm703_vm2, %v790_v47  ;;  %1779 = vmatpush3.msra.mxu0 %v1381_v28 }
 0x360   : > { %1745 = vmatpush3.xpose.msk.msra.mxu1 %vm703_vm2, %v868_v39  ;;  %1746 = vmatprep.mubr.msk.f32.mxu1 %vm2106_vm0, %v2105_v0  ;;  %v1659_v39 = vld [vmem:[%s2529_s7] ss:$0 sm:$0xff] }
 0x361   : > { %1749 = vmatprep.subr.mxu1 %v2105_v0  ;;  %1780 = vmatprep.subr.mxu0 %v2105_v0 }
 0x362   : > { %1781 = vmatpush3.msra.mxu0 %v1380_v30 }
 0x363   : > { %1747 = vmatmul.mubr.msk.f32.vlgmr.msra.gmra.mxu1 %vm703_vm2, %v866_v40 }
 0x364   : > { %1751 = vmatprep.mubr.msk.f32.mxu1 %vm2106_vm0, %v2105_v0 }
 0x416   : > { %v1111_v48 = vpop.f32.mrf.mxu0 }
 0x417   : > { %v1112_v49 = vadd.f32 %v1646_v25, %v1111_v48 }
 0x418   : > { %v1758_v50 = vpop.f32.mrf.mxu0 }
 0x419   : > { %v1115_v51 = vsel %vm703_vm2, %v1112_v49, -inf }
 0x41a   : > { %1116 = vmax.xlane.f32.xlu0 %v1115_v51  ;;  %v1282_v52 = vpop.f32.mrf.mxu0 }
 0x41b   : > { %v1283_v59 = vadd.f32 %v1646_v25, %v1282_v52 }
 0x41c   : > { %v1768_v53 = vpop.f32.mrf.mxu0 }
 0x41d   : > { %v1286_v61 = vsel %vm703_vm2, %v1283_v59, -inf }
 0x41f   : > { %v860_v54 = vpop.f32.mrf.mxu1 }
 0x420   : > { %864 = vst.msk [vmem:[#allocation2] sm:$0xff] %vm703_vm2, %v860_v54 }
 0x421   : > { %v1743_v55 = vpop.f32.mrf.mxu1 }
 0x423   : > { %v939_v56 = vpop.f32.mrf.mxu1 }
 0x424   : > { %v940_v57 = vadd.f32 %v1646_v25, %v939_v56 }
 0x425   : > { %v1748_v58 = vpop.f32.mrf.mxu1 }
 0x426   : > { %v943_v60 = vsel %vm703_vm2, %v940_v57, -inf }
 0x427   : > { %944 = vmax.xlane.f32.xlu1 %v943_v60 }
 0x42b   : > { %1287 = vmax.xlane.f32.xlu1 %v1286_v61 }
 0x4a3   : > { %v1117_v62 = vpop.xlane.xlu0 %1116 }
 0x4a4   : > { %v1118_v63 = vsub.f32 %v1112_v49, %v1117_v62 }
 0x4a6   : > { %v1119_v1 = vmul.f32 1.442695, %v1118_v63 }
 0x4a8   : > { %1876 = vpow2.f32 %v1119_v1 }
 0x4b0   : > { %v945_v2 = vpop.xlane.xlu1 %944 }
 0x4b1   : > { %v946_v10 = vsub.f32 %v940_v57, %v945_v2 }
 0x4b3   : > { %v947_v11 = vmul.f32 1.442695, %v946_v10 }
 0x4b4   : > { %v1288_v3 = vpop.xlane.xlu1 %1287 }
 0x4b5   : > { %v1877_v4 = vpop.eup %1876  ;;  %v1289_v5 = vsub.f32 %v1283_v59, %v1288_v3 }
 0x4b6   : > { %v1121_v6 = vsel %vm703_vm2, %v1877_v4, 0.0 }
 0x4b7   : > { %v1290_v7 = vmul.f32 1.442695, %v1289_v5  ;;  %1122 = vadd.xlane.f32.xlu0 %v1121_v6 }
 0x4b9   : > { %1878 = vpow2.f32 %v1290_v7 }
 0x4ba   : > { %1880 = vpow2.f32 %v947_v11 }
 0x4c6   : > { %v1879_v8 = vpop.eup %1878 }
 0x4c7   : > { %v1292_v9 = vsel %vm703_vm2, %v1879_v8, 0.0  ;;  %v1881_v12 = vpop.eup %1880 }
 0x4c8   : > { %1293 = vadd.xlane.f32.xlu1 %v1292_v9  ;;  %v949_v13 = vsel %vm703_vm2, %v1881_v12, 0.0 }
 0x4cd   : > { %955 = vrot.lane.b32.xlu0 %v2427_v37, %s2107_s22  ;;  %s2573_s22 = sld [smem:[#allocation24_spill]] }
 0x4d9   : > { %1126 = vrot.lane.b32.xlu1 %v2427_v37, %s2108_s24  ;;  %s2484_s24 = scalar_lea.hbm %s2573_s22, %s1662_s12 }
 0x4fd   : > { %950 = vadd.xlane.f32.xlu1 %v949_v13 }
 0x50e   : > { %1297 = vrot.lane.b32.xlu1 %v2427_v37, %s2109_s19  ;;  %s1466_s19 = scalar_lea.sflag [#allocation5], %s2346_s0 }
 0x540   : > { %v1123_v14 = vpop.xlane.xlu0 %1122 }
 0x544   : > { %v956_v15 = vpop.permute.xlu0 %955 }
 0x545   : > { %1750 = vmatpush3.msra.mxu1 %v956_v15 }
 0x546   : > { %1759 = vmatprep.subr.mxu1 %v2105_v0 }
 0x551   : > { %v1294_v16 = vpop.xlane.xlu1 %1293 }
 0x555   : > { %v1127_v17 = vpop.permute.xlu1 %1126 }
 0x586   : > { %v951_v18 = vpop.xlane.xlu1 %950 }
 0x587   : > { %1882 = vrcp.f32 %v951_v18 }
 0x588   : > { %1884 = vrcp.f32 %v1123_v14 }
 0x589   : > { %1886 = vrcp.f32 %v1294_v16 }
 0x58a   : > { %v1298_v24 = vpop.permute.xlu1 %1297 }
 0x594   : > { %v1883_v19 = vpop.eup %1882 }
 0x595   : > { %v953_v20 = vmul.f32 %v1883_v19, %v1881_v12  ;;  %v1885_v21 = vpop.eup %1884 }
 0x596   : > { %v1125_v22 = vmul.f32 %v1885_v21, %v1877_v4  ;;  %v1887_v23 = vpop.eup %1886 }
 0x597   : > { %1752 = vmatmul.mubr.msk.f32.vlgmr.msra.gmra.mxu1 %vm703_vm2, %v953_v20  ;;  %v1296_v25 = vmul.f32 %v1887_v23, %v1879_v8 }
 0x598   : > { %1760 = vmatpush3.msra.mxu1 %v1127_v17  ;;  %1761 = vmatprep.mubr.msk.f32.mxu1 %vm2106_vm0, %v2105_v0 }
 0x599   : > { %1769 = vmatprep.subr.mxu1 %v2105_v0 }
 0x59b   : > { %1762 = vmatmul.mubr.msk.f32.vlgmr.msra.gmra.mxu1 %vm703_vm2, %v1125_v22 }
 0x59c   : > { %1770 = vmatpush3.msra.mxu1 %v1298_v24  ;;  %1771 = vmatprep.mubr.msk.f32.mxu1 %vm2106_vm0, %v2105_v0 }
 0x59f   : > { %1772 = vmatmul.mubr.msk.f32.vlgmr.msra.gmra.mxu1 %vm703_vm2, %v1296_v25 }
 0x657   : > { %v1027_v29 = vpop.f32.mrf.mxu1 }
 0x658   : > { %1032 = vrot.lane.b32.xlu0 %v1027_v29, %s2110_s4 }
 0x659   : > { %v1753_v31 = vpop.f32.mrf.mxu1 }
 0x65b   : > { %v1198_v32 = vpop.f32.mrf.mxu1 }
 0x65c   : > { %1203 = vrot.lane.b32.xlu1 %v1198_v32, %s2111_s17 }
 0x65d   : > { %v1763_v33 = vpop.f32.mrf.mxu1 }
 0x65f   : > { %v1369_v34 = vpop.f32.mrf.mxu1 }
 0x660   : > { %1374 = vrot.lane.b32.xlu0 %v1369_v34, %s2112_s13 }
 0x661   : > { %v1773_v35 = vpop.f32.mrf.mxu1 }
 0x6ca   : > { %v1033_v36 = vpop.permute.xlu0 %1032 }
 0x6cb   : > { %1036 = vst.msk [vmem:[#allocation2] sm:$0xff] %vm1035_vm3, %v1033_v36 }
 0x6ce   : > { %v1204_v37 = vpop.permute.xlu1 %1203 }
 0x6cf   : > { %1207 = vst.msk [vmem:[#allocation2] sm:$0xff] %vm1206_vm4, %v1204_v37 }
 0x6d2   : > { %v1375_v0 = vpop.permute.xlu0 %1374 }
 0x6d3   : > { %1378 = vst.msk [vmem:[#allocation2] sm:$0xff] %vm1377_vm5, %v1375_v0 }
 0x6da   : > { %v1379_v38 = vld [vmem:[#allocation2] sm:$0xff] }
 0x6db   : > { %1783 = vmatmul.mubr.msk.f32.vlgmr.msra.gmra.mxu0 %vm447_vm1, %v1379_v38 }
 0x79b   : > { %v1460_v40 = vpop.f32.mrf.mxu0 }
 0x79c   : > { %v1461_v41 = vadd.f32 %v1659_v39, %v1460_v40 }
 0x79d   : > { %v1784_v42 = vpop.f32.mrf.mxu0 }
 0x79e   : > { %1464 = vst.msk [vmem:[%s431_s11] sm:$0xff] %vm447_vm1, %v1461_v41 }
 0x79f   : > { %2037 = shalt.err (!%p2034_p13)
}
 0x7a0   : > { %s2038_s14 = scalar_lea.hbm %s2484_s24, 128  ;;  %s2042_s23 = scalar_lea.hbm %s2573_s22, 256 }
 0x7a1   : > { %p2039_p1 = scmp.ne.s32.totalorder %s2484_s24, %s2038_s14  ;;  %p2043_p9 = scmp.lt.s32.totalorder %s2484_s24, %s2573_s22 }
 0x7a2   : > { %p2044_p12 = scmp.lt.s32.totalorder %s2042_s23, %s2038_s14 }
 0x7a3   : > { %p2040_p6 = pnand %p2039_p1, %p2574_p3 }
 0x7a4   : > { %p2045_p7 = por %p2044_p12, %p2043_p9 }
 0x7a5   : > { %p2041_p10 = pneg %p2040_p6 }
 0x7a7   : > { %p2046_p0 = pnand %p2045_p7, %p2041_p10 }
 0x7a9   : > { %2049 = shalt.err (!%p2046_p0)
}
 0x7aa   : > { %1799 = dma.vmem_to_hbm [thread:$0]  (%p2574_p3), %s1480_s30, 128, %s2484_s24, %s1466_s19  }
 0x7ab PF: > { %s2575_s17 = sld [smem:[#allocation17_spill]] }
 0x7ac   : > { %s2576_s13 = sld [smem:[#allocation19_spill]] }
 0x7ad   : > { %s2577_s10 = sld [smem:[#allocation18_spill]] }
 0x7b1   : > { %s1491_s15 = sand.u32 1, %s2575_s17  }
 0x7b2   : > { %p2578_p5 = scmp.ne.s32.totalorder %s2576_s13, 0  ;;  %s1492_s12 = scalar_lea.sflag [#allocation5], %s1491_s15 }
 0x7b3   : > { %p2579_p2 = scmp.ge.s32.totalorder %s2577_s10, 2 }
 0x7b5   : > { %p1819_p4 = pnand %p2579_p2, %p2578_p5 }
 0x7b7   : > { %p1820_p8 = pneg %p1819_p4 }
 0x7b9   : > { %2079 = dma.done.wait (%p1820_p8), %s1492_s12, 128  }
 0x7ba   : > { %2081 = vsyncadd (%p1820_p8), %s1492_s12, 4294967168  ;;  %s2580_s30 = sld [smem:[#allocation20_spill]]  ;;  %s2582_s27 = smov %s2088_s28 }
 0x7bb   : > { %s2581_s11 = sld [smem:[#allocation21_spill]]  ;;  %s2583_s28 = smov %s2092_s29 }
 0x7c0   : > { %p25_p11 = scmp.ge.s32.totalorder %s2580_s30, 4  }
 0x7c1   : > { %s2584_s29 = smov %s2581_s11 }
 0x7c2   :  { %27 = sbr.rel (!%p25_p11) target bundleno = 12 (0xc), region = 136 }
 0x7c7   :  { %1497 = vsyncpa [#allocation4], 1 }
 0x7c8   :  { %1499 = vsyncpa [#allocation4 + $0x1], 1 }
 0x7c9   :  { %1500 = vsyncpa [#allocation7], 1 }
 0x7ca   :  { %1502 = vsyncpa [#allocation7 + $0x1], 1 }
 0x7cb   :  { %1503 = vsyncpa [#allocation10], 1 }
 0x7cc   :  { %1504 = vsyncpa [#allocation5], 1 }
 0x7cd   :  { %1506 = vsyncpa [#allocation5 + $0x1], 1 }

</bundles_post_ra>
